<compile_context>
chip_gen: v7x
topology: tpu7x:2x2x1
jax: 0.10.0
libtpu: 0.0.40
codegen_flags: <defaults>
</compile_context>

<pallas_src>
import jax
import jax.numpy as jnp
from jax.experimental import pallas as pl
from jax.experimental.pallas import tpu as pltpu


def _vmem_budgets():
    """(per-step block budget, vmem_limit_bytes), generation-aware."""
    cap = 128 << 20
    try:
        cap = int(getattr(pltpu.get_tpu_info(), "vmem_capacity_bytes", cap))
    except Exception:
        pass
    if cap <= (80 << 20):              # v7x-class: 64 MiB VMEM per TensorCore
        return 14 << 20, 36 << 20
    return 24 << 20, 64 << 20          # v5e / v6e: 128 MiB VMEM


def _pick_batch_block(n, hbm_bytes_per_elem, vmem_bytes_per_elem, vmem_budget,
                      hbm_target=4 << 20):
    """Largest divisor of n such that the per-step block fits the VMEM budget and
    the grid keeps >= 2 steps (v7x megacore), stopping once each step moves
    ~hbm_target bytes of HBM traffic (amortizes the ~0.35us per-step overhead)."""
    max_bb = n if n < 2 else n // 2
    best = 1
    for bb in range(1, max_bb + 1):
        if n % bb:
            continue
        if bb * vmem_bytes_per_elem > vmem_budget:
            break
        best = bb
        if bb * hbm_bytes_per_elem >= hbm_target:
            break
    return best


def _conv_down_kernel(x_ref, w_ref, b_ref, o_ref, xs):
    # x_ref : (B, C_in, L)            NCL input tile
    # w_ref : (3, C_in, C_out)        per-tap weights (already transposed)
    # b_ref : (1, C_out)              bias (f32)
    # o_ref : (B, L_out, C_out)       NLC output tile (single lane-dense store)
    # xs    : (B, 2*L_out + 1, C_in)  channel-last scratch; row r holds x[r-1]
    B, C_in, L = x_ref.shape
    L_out = o_ref.shape[1]
    C_out = o_ref.shape[2]

    # Zero halo rows: row 0 (left pad, x[-1]) always; row 2*L_out (right pad,
    # x[L]) only when L is odd — for even L that row is overwritten below.
    xs[:, pl.ds(0, 1), :] = jnp.zeros((B, 1, C_in), xs.dtype)
    if L < 2 * L_out:                     # static Python condition: odd L
        xs[:, pl.ds(2 * L_out, 1), :] = jnp.zeros((B, 1, C_in), xs.dtype)

    # One block-level channel-last relayout (batched XLU transpose), offset by
    # one row so the left halo is simply row 0 (no roll / concat / mask needed).
    xs[:, pl.ds(1, L), :] = jnp.transpose(x_ref[...], (0, 2, 1))

    # Stride-2 sublane taps over the whole block:
    #   tap k reads scratch rows 2*lo + k  ==  x[2*lo + k - 1]   (k=3, s=2, p=1)
    BL = B * L_out
    t0 = xs[:, pl.ds(0, L_out, stride=2), :].reshape(BL, C_in)
    t1 = xs[:, pl.ds(1, L_out, stride=2), :].reshape(BL, C_in)
    t2 = xs[:, pl.ds(2, L_out, stride=2), :].reshape(BL, C_in)

    # Three accumulating MXU dots; no im2col lane-concat, f32 accumulation, and
    # the result lands with C_out on the lane axis (dense store below).
    acc = jnp.dot(t0, w_ref[0], preferred_element_type=jnp.float32)
    acc = acc + jnp.dot(t1, w_ref[1], preferred_element_type=jnp.float32)
    acc = acc + jnp.dot(t2, w_ref[2], preferred_element_type=jnp.float32)
    acc = acc + b_ref[...]

    o_ref[...] = acc.reshape(B, L_out, C_out).astype(o_ref.dtype)


def _avgpool_down_kernel(x_ref, o_ref, xs):
    # x_ref : (B, C, L)        NCL input tile
    # o_ref : (B, L_out, C)    NLC output tile (lane-dense store), L_out = L // 2
    # xs    : (B, L, C)        channel-last scratch
    B, C, L = x_ref.shape
    L_out = o_ref.shape[1]
    xs[...] = jnp.transpose(x_ref[...], (0, 2, 1))        # one batched relayout
    even = xs[:, pl.ds(0, L_out, stride=2), :]
    odd = xs[:, pl.ds(1, L_out, stride=2), :]
    o_ref[...] = ((even + odd) * 0.5).astype(o_ref.dtype)


def downsample1d(x_ncl, weight=None, bias=None, use_conv=True):
    """x_ncl: (N, C_in, L) like PyTorch. Returns (N, C_out, L_out) in NCL."""
    N, C_in, L = x_ncl.shape
    isz = jnp.dtype(x_ncl.dtype).itemsize
    blk_budget, vmem_limit = _vmem_budgets()
    cparams = pltpu.CompilerParams(
        dimension_semantics=("parallel",),
        vmem_limit_bytes=vmem_limit)

    if use_conv:
        C_out = weight.shape[0]
        L_out = (L - 1) // 2 + 1                     # k=3, stride=2, pad=1
        # Per-tap weights (3, C_in, C_out); cast to the activation dtype is an
        # intentional mixed-precision choice (accumulation stays f32 on the MXU).
        w = jnp.transpose(weight, (2, 1, 0)).astype(x_ncl.dtype)
        b2 = bias.reshape(1, C_out).astype(jnp.float32)

        hbm_per = (C_in * L + L_out * C_out) * isz                     # read + write
        vmem_per = (2 * C_in * L + 2 * L_out * C_out
                    + (2 * L_out + 1) * C_in) * isz                    # bufs + scratch
        fixed = 2 * (3 * C_in * C_out * isz + C_out * 4)               # weights + bias
        B_blk = _pick_batch_block(N, hbm_per, vmem_per, blk_budget - fixed)

        out_nlc = pl.pallas_call(
            _conv_down_kernel,
            out_shape=jax.ShapeDtypeStruct((N, L_out, C_out), x_ncl.dtype),
            grid=(N // B_blk,),
            in_specs=[
                pl.BlockSpec((B_blk, C_in, L), lambda n: (n, 0, 0)),
                pl.BlockSpec((3, C_in, C_out), lambda n: (0, 0, 0)),
                pl.BlockSpec((1, C_out), lambda n: (0, 0)),
            ],
            out_specs=pl.BlockSpec((B_blk, L_out, C_out), lambda n: (n, 0, 0)),
            scratch_shapes=[pltpu.VMEM((B_blk, 2 * L_out + 1, C_in), x_ncl.dtype)],
            compiler_params=cparams,
        )(x_ncl, w, b2)
        return jnp.swapaxes(out_nlc, 1, 2)           # NLC -> NCL (cheap wrapper plumbing)

    # AvgPool1d(2, 2) path (dim == out_dim); odd-L tail is dropped (PyTorch).
    L_out = L // 2
    hbm_per = (C_in * L + C_in * L_out) * isz
    vmem_per = (2 * C_in * L + 2 * C_in * L_out + C_in * L) * isz
    B_blk = _pick_batch_block(N, hbm_per, vmem_per, blk_budget)
    out_nlc = pl.pallas_call(
        _avgpool_down_kernel,
        out_shape=jax.ShapeDtypeStruct((N, L_out, C_in), x_ncl.dtype),
        grid=(N // B_blk,),
        in_specs=[pl.BlockSpec((B_blk, C_in, L), lambda n: (n, 0, 0))],
        out_specs=pl.BlockSpec((B_blk, L_out, C_in), lambda n: (n, 0, 0)),
        scratch_shapes=[pltpu.VMEM((B_blk, L, C_in), x_ncl.dtype)],
        compiler_params=cparams,
    )(x_ncl)
    return jnp.swapaxes(out_nlc, 1, 2)


if __name__ == "__main__":
    key = jax.random.PRNGKey(0)
    k1, k2, k3, k4 = jax.random.split(key, 4)

    # Small shapes consistent with the module: Conv1d(dim=4 -> out_dim=8, k=3, s=2, p=1)
    N, C_in, L, C_out = 2, 4, 16, 8
    x = jax.random.normal(k1, (N, C_in, L), jnp.float32)

    # Deterministic PyTorch-style init: U(-1/sqrt(fan_in), 1/sqrt(fan_in))
    fan_in = C_in * 3
    bound = 1.0 / (fan_in ** 0.5)
    weight = jax.random.uniform(k2, (C_out, C_in, 3), jnp.float32, -bound, bound)
    bias = jax.random.uniform(k3, (C_out,), jnp.float32, -bound, bound)

    # Conv path (default use_conv=True), even L.
    out = jax.block_until_ready(downsample1d(x, weight, bias, use_conv=True))
    assert out.shape == (N, C_out, (L - 1) // 2 + 1)
    ref = jax.lax.conv_general_dilated(
        x, weight, window_strides=(2,), padding=[(1, 1)],
        dimension_numbers=("NCH", "OIH", "NCH"),
    ) + bias[None, :, None]
    assert jnp.allclose(out, ref, atol=1e-5, rtol=1e-5)

    # Conv path, odd L (exercises the right zero-halo row).
    L_odd = 15
    x_odd = jax.random.normal(k4, (N, C_in, L_odd), jnp.float32)
    out_odd = jax.block_until_ready(downsample1d(x_odd, weight, bias, use_conv=True))
    ref_odd = jax.lax.conv_general_dilated(
        x_odd, weight, window_strides=(2,), padding=[(1, 1)],
        dimension_numbers=("NCH", "OIH", "NCH"),
    ) + bias[None, :, None]
    assert out_odd.shape == (N, C_out, (L_odd - 1) // 2 + 1)
    assert jnp.allclose(out_odd, ref_odd, atol=1e-5, rtol=1e-5)

    # AvgPool path (use_conv=False, dim == out_dim).
    out_pool = jax.block_until_ready(downsample1d(x, use_conv=False))
    ref_pool = 0.5 * (x[:, :, 0::2] + x[:, :, 1::2])
    assert out_pool.shape == (N, C_in, L // 2)
    assert jnp.allclose(out_pool, ref_pool, atol=1e-6)

    print("KERNEL_OK")
</pallas_src>

<mosaic_0001>
module attributes {stable_mosaic.version = 11 : i64} {
  func.func @_conv_down_kernel(%arg0: i32, %arg1: memref<1x4x16xf32, #tpu.memory_space<vmem>>, %arg2: memref<3x4x8xf32, #tpu.memory_space<vmem>>, %arg3: memref<1x8xf32, #tpu.memory_space<vmem>>, %arg4: memref<1x8x8xf32, #tpu.memory_space<vmem>>, %arg5: memref<1x17x4xf32, #tpu.memory_space<vmem>>) attributes {dimension_semantics = [#tpu.dimension_semantics<parallel>], iteration_bounds = array<i64: 2>, scalar_prefetch = 0 : i64, scratch_operands = 1 : i64, tpu.core_type = #tpu.core_type<tc>, window_params = [{transform_indices = @transform_0, window_bounds = array<i64: 1, 4, 16>}, {pipeline_mode = #tpu.pipeline_mode<synchronous>, transform_indices = @transform_1, window_bounds = array<i64: 3, 4, 8>}, {pipeline_mode = #tpu.pipeline_mode<synchronous>, transform_indices = @transform_2, window_bounds = array<i64: 1, 8>}, {transform_indices = @transform_3, window_bounds = array<i64: 1, 8, 8>}]} {
    %cst = arith.constant 0.000000e+00 : f32
    %0 = vector.broadcast %cst : f32 to vector<1x1x4xf32>
    %c0 = arith.constant 0 : index
    %c0_0 = arith.constant 0 : index
    %c0_1 = arith.constant 0 : index
    %1 = vector.load %arg5[%c0, %c0_0, %c0_1] : memref<1x17x4xf32, #tpu.memory_space<vmem>>, vector<1x1x4xf32>
    tpu.vector_store %arg5[%c0, %c0_0, %c0_1], %0 {strides = array<i32>} : memref<1x17x4xf32, #tpu.memory_space<vmem>>, vector<1x1x4xf32>,
    %c0_2 = arith.constant 0 : index
    %c0_3 = arith.constant 0 : index
    %c0_4 = arith.constant 0 : index
    %2 = vector.load %arg1[%c0_2, %c0_3, %c0_4] : memref<1x4x16xf32, #tpu.memory_space<vmem>>, vector<1x4x16xf32>
    %3 = tpu.transpose %2, [0, 2, 1] : vector<1x4x16xf32> -> vector<1x16x4xf32>
    %c0_5 = arith.constant 0 : index
    %c1 = arith.constant 1 : index
    %c0_6 = arith.constant 0 : index
    %4 = vector.load %arg5[%c0_5, %c1, %c0_6] : memref<1x17x4xf32, #tpu.memory_space<vmem>>, vector<1x16x4xf32>
    tpu.vector_store %arg5[%c0_5, %c1, %c0_6], %3 {strides = array<i32>} : memref<1x17x4xf32, #tpu.memory_space<vmem>>, vector<1x16x4xf32>,
    %c0_7 = arith.constant 0 : index
    %c0_8 = arith.constant 0 : index
    %c0_9 = arith.constant 0 : index
    %5 = tpu.strided_load %arg5[%c0_7, %c0_8, %c0_9] {strides = array<i32: 1, 2, 1>} : memref<1x17x4xf32, #tpu.memory_space<vmem>>, vector<1x8x4xf32>
    %6 = vector.shape_cast %5 : vector<1x8x4xf32> to vector<8x4xf32>
    %c0_10 = arith.constant 0 : index
    %c1_11 = arith.constant 1 : index
    %c0_12 = arith.constant 0 : index
    %7 = tpu.strided_load %arg5[%c0_10, %c1_11, %c0_12] {strides = array<i32: 1, 2, 1>} : memref<1x17x4xf32, #tpu.memory_space<vmem>>, vector<1x8x4xf32>
    %8 = vector.shape_cast %7 : vector<1x8x4xf32> to vector<8x4xf32>
    %c0_13 = arith.constant 0 : index
    %c2 = arith.constant 2 : index
    %c0_14 = arith.constant 0 : index
    %9 = tpu.strided_load %arg5[%c0_13, %c2, %c0_14] {strides = array<i32: 1, 2, 1>} : memref<1x17x4xf32, #tpu.memory_space<vmem>>, vector<1x8x4xf32>
    %10 = vector.shape_cast %9 : vector<1x8x4xf32> to vector<8x4xf32>
    %c0_15 = arith.constant 0 : index
    %c0_16 = arith.constant 0 : index
    %c0_17 = arith.constant 0 : index
    %11 = vector.load %arg2[%c0_15, %c0_16, %c0_17] : memref<3x4x8xf32, #tpu.memory_space<vmem>>, vector<1x4x8xf32>
    %12 = vector.shape_cast %11 : vector<1x4x8xf32> to vector<4x8xf32>
    %cst_18 = arith.constant dense<0.000000e+00> : vector<8x8xf32>
    %13 = tpu.matmul %6, %12, %cst_18 {dimension_numbers = #tpu.dot_dimension_numbers<[1], [0], [0], [1], [0, 0, 1, 1], [], []>} : vector<8x4xf32>, vector<4x8xf32>, vector<8x8xf32> -> vector<8x8xf32>
    %c1_19 = arith.constant 1 : index
    %c0_20 = arith.constant 0 : index
    %c0_21 = arith.constant 0 : index
    %14 = vector.load %arg2[%c1_19, %c0_20, %c0_21] : memref<3x4x8xf32, #tpu.memory_space<vmem>>, vector<1x4x8xf32>
    %15 = vector.shape_cast %14 : vector<1x4x8xf32> to vector<4x8xf32>
    %cst_22 = arith.constant dense<0.000000e+00> : vector<8x8xf32>
    %16 = tpu.matmul %8, %15, %cst_22 {dimension_numbers = #tpu.dot_dimension_numbers<[1], [0], [0], [1], [0, 0, 1, 1], [], []>} : vector<8x4xf32>, vector<4x8xf32>, vector<8x8xf32> -> vector<8x8xf32>
    %17 = arith.addf %13, %16 : vector<8x8xf32>
    %c2_23 = arith.constant 2 : index
    %c0_24 = arith.constant 0 : index
    %c0_25 = arith.constant 0 : index
    %18 = vector.load %arg2[%c2_23, %c0_24, %c0_25] : memref<3x4x8xf32, #tpu.memory_space<vmem>>, vector<1x4x8xf32>
    %19 = vector.shape_cast %18 : vector<1x4x8xf32> to vector<4x8xf32>
    %cst_26 = arith.constant dense<0.000000e+00> : vector<8x8xf32>
    %20 = tpu.matmul %10, %19, %cst_26 {dimension_numbers = #tpu.dot_dimension_numbers<[1], [0], [0], [1], [0, 0, 1, 1], [], []>} : vector<8x4xf32>, vector<4x8xf32>, vector<8x8xf32> -> vector<8x8xf32>
    %21 = arith.addf %17, %20 : vector<8x8xf32>
    %c0_27 = arith.constant 0 : index
    %c0_28 = arith.constant 0 : index
    %22 = vector.load %arg3[%c0_27, %c0_28] : memref<1x8xf32, #tpu.memory_space<vmem>>, vector<1x8xf32>
    %23 = vector.broadcast %22 : vector<1x8xf32> to vector<8x8xf32>
    %24 = arith.addf %21, %23 : vector<8x8xf32>
    %25 = vector.shape_cast %24 : vector<8x8xf32> to vector<1x8x8xf32>
    %c0_29 = arith.constant 0 : index
    %c0_30 = arith.constant 0 : index
    %c0_31 = arith.constant 0 : index
    %26 = vector.load %arg4[%c0_29, %c0_30, %c0_31] : memref<1x8x8xf32, #tpu.memory_space<vmem>>, vector<1x8x8xf32>
    tpu.vector_store %arg4[%c0_29, %c0_30, %c0_31], %25 {strides = array<i32>} : memref<1x8x8xf32, #tpu.memory_space<vmem>>, vector<1x8x8xf32>,
    return
  }
  func.func @transform_0(%arg0: i32) -> (i32, i32, i32) {
    %c0_i32 = arith.constant 0 : i32
    %c0_i32_0 = arith.constant 0 : i32
    %c0_i32_1 = arith.constant 0 : i32
    return %arg0, %c0_i32, %c0_i32_0 : i32, i32, i32
  }
  func.func @transform_1(%arg0: i32) -> (i32, i32, i32) {
    %c0_i32 = arith.constant 0 : i32
    %c0_i32_0 = arith.constant 0 : i32
    %c0_i32_1 = arith.constant 0 : i32
    %c0_i32_2 = arith.constant 0 : i32
    return %c0_i32, %c0_i32_0, %c0_i32_1 : i32, i32, i32
  }
  func.func @transform_2(%arg0: i32) -> (i32, i32) {
    %c0_i32 = arith.constant 0 : i32
    %c0_i32_0 = arith.constant 0 : i32
    %c0_i32_1 = arith.constant 0 : i32
    return %c0_i32, %c0_i32_0 : i32, i32
  }
  func.func @transform_3(%arg0: i32) -> (i32, i32, i32) {
    %c0_i32 = arith.constant 0 : i32
    %c0_i32_0 = arith.constant 0 : i32
    %c0_i32_1 = arith.constant 0 : i32
    return %arg0, %c0_i32, %c0_i32_0 : i32, i32, i32
  }
}

</mosaic_0001>

<bundles_post_ra>
// kernel: tpu_custom_call.1
= control target key start
LH: loop header
LB: loop body
LE: loop exit
PB: predicated region body
PF: predicated region fallthrough
CT: control target
= control target key end

     0   :  { %8 = vsyncpa [#allocation4], 0  ;;  %s1142_s0 = inlined_call_operand.hbm [shape: f32[2,4,16], index: 0, kind: input, shape index: {}]   ;;  %s1143_s1 = inlined_call_operand.hbm [shape: f32[3,4,8], index: 1, kind: input, shape index: {}]   ;;  %s1144_s2 = inlined_call_operand.hbm [shape: f32[1,8], index: 2, kind: input, shape index: {}]   ;;  %s1145_s3 = inlined_call_operand.hbm [shape: f32[2,8,8], index: 3, kind: output, shape index: {}]  }
   0x1   :  { %10 = vsyncpa [#allocation4 + $0x1], 0 }
   0x2   :  { %11 = vsyncpa [#allocation7], 0 }
   0x3   :  { %12 = vsyncpa [#allocation5], 0 }
   0x4   :  { %14 = vsyncpa [#allocation5 + $0x1], 0  ;;  %s905_s12 = smov 0   ;;  %s907_s13 = smov 0  }
   0x5   :  { %s909_s14 = smov 0   ;;  %s911_s15 = smov 0  }
   0x6 LB: > { %s926_s16 = sadd.s32 4294967295, %s875_s15   ;;  %s604_s17 = sadd.s32 4294967294, %s875_s15   ;;  %s875_s15 = sphi %s911_s15, %s1165_s15   ;;  %s871_s14 = sphi %s909_s14, %s1164_s14   ;;  %s867_s13 = sphi %s907_s13, %s1163_s13   ;;  %s863_s12 = sphi %s905_s12, %s1162_s12  }
   0x7   : > { %p40_p0 = scmp.ne.s32.totalorder %s867_s13, %s863_s12  ;;  %p1146_p1 = scmp.eq.s32.totalorder %s926_s16, 0 }
   0x8   : > { %p112_p3 = scmp.eq.s32.totalorder %s604_s17, 1  ;;  %p605_p5 = scmp.ge.s32.totalorder %s875_s15, 1 }
   0x9   : > { %p935_p4 = por %p1146_p1, %p40_p0  ;;  %p119_p7 = scmp.lt.s32.totalorder %s875_s15, 3 }
   0xa   : > { %p940_p6 = por %p112_p3, %p40_p0  ;;  %s877_s21 = smov [#allocation6]  }
   0xb   : > { %s1149_s18 = scalar_select %p935_p4, 1, 0 }
   0xc   : > { %s1150_s19 = scalar_select %p940_p6, 1, 0 }
   0xd   : > { %p945_p8 = pnand %p605_p5, %p119_p7  ;;  %s131_s22 = sshll.u32 %s877_s21, 4  ;;  %s949_s22 = int_to_ptr.vmem [resolvable:$true] %s131_s22 }
   0xe   : > { %s878_s24 = smov [#allocation8]   ;;  %s719_s28 = scalar_lea.hbm %s1143_s1, 192 }
   0xf   : > { %p660_p9 = pneg %p945_p8  ;;  %s145_s25 = sshll.u32 %s878_s24, 4  ;;  %s960_s25 = int_to_ptr.vmem [resolvable:$true] %s145_s25 }
  0x10   : > { %p720_p12 = scmp.ne.s32.totalorder %s1143_s1, %s719_s28  ;;  %p726_p5 = scmp.lt.u32.totalorder %s719_s28, %s1143_s1 }
  0x11   : > { %p956_p11 = pnand %p660_p9, %p1146_p1 }
  0x13   : > { %p721_p13 = pneg %p956_p11 }
  0x15   : > { %p722_p0 = pnand %p721_p13, %p720_p12 }
  0x17   : > { %p723_p3 = pneg %p722_p0 }
  0x19   : > { %p728_p7 = pnand %p726_p5, %p723_p3 }
  0x1b   : > { %731 = shalt.err (!%p728_p7)
}
  0x1c   : > { %s732_s6 = scalar_lea.vmem %s949_s22, 192  ;;  %p740_p2 = scmp.lt.s32.totalorder %s949_s22, %s949_s22 }
  0x1d   : > { %p733_p9 = scmp.ne.s32.totalorder %s949_s22, %s732_s6  ;;  %p741_p12 = scmp.lt.s32.totalorder %s732_s6, %s732_s6 }
  0x1f   : > { %p735_p10 = pnand %p733_p9, %p721_p13  ;;  %p742_p0 = por %p741_p12, %p740_p2 }
  0x21   : > { %p736_p1 = pneg %p735_p10 }
  0x23   : > { %p743_p6 = pnand %p742_p0, %p736_p1 }
  0x25   : > { %746 = shalt.err (!%p743_p6)
}
  0x26   : > { %s879_s7 = smov 64   ;;  %s880_s8 = smov 4  }
  0x27   : > { %663 = dma.hbm_to_vmem [thread:$0]  (!%p956_p11), %s1143_s1, 192, %s949_s22, [#allocation7], %s879_s7, %s879_s7, %s880_s8  }
  0x28   : > { %s747_s21 = scalar_lea.hbm %s1144_s2, 16 }
  0x29   : > { %p748_p2 = scmp.ne.s32.totalorder %s1144_s2, %s747_s21  ;;  %p754_p10 = scmp.lt.u32.totalorder %s747_s21, %s1144_s2 }
  0x2b   : > { %p750_p1 = pnand %p748_p2, %p721_p13 }
  0x2d   : > { %p751_p6 = pneg %p750_p1 }
  0x2f   : > { %p756_p3 = pnand %p754_p10, %p751_p6 }
  0x31   : > { %759 = shalt.err (!%p756_p3)
}
  0x32   : > { %s760_s22 = scalar_lea.vmem %s960_s25, 16  ;;  %s767_s29 = scalar_lea.vmem %s960_s25, 32 }
  0x33   : > { %p761_p5 = scmp.ne.s32.totalorder %s960_s25, %s760_s22  ;;  %p768_p12 = scmp.lt.s32.totalorder %s960_s25, %s960_s25 }
  0x34   : > { %p769_p0 = scmp.lt.s32.totalorder %s767_s29, %s760_s22 }
  0x35   : > { %p763_p7 = pnand %p761_p5, %p721_p13 }
  0x36   : > { %p770_p2 = por %p769_p0, %p768_p12 }
  0x37   : > { %p764_p9 = pneg %p763_p7 }
  0x39   : > { %p771_p1 = pnand %p770_p2, %p764_p9 }
  0x3b   : > { %774 = shalt.err (!%p771_p1)
}
  0x3c   : > { %666 = dma.hbm_to_vmem [thread:$0]  (!%p956_p11), %s1144_s2, 16, %s960_s25, [#allocation7]  }
  0x3d   : > { %s1016_s5 = sadd.s32 1, %s875_s15   ;;  %s27_s23 = sadd.s32 1, %s871_s14 }
  0x3e   : > { %s24_s6 = ssub.s32 %s875_s15, %s1016_s5  ;;  %p34_p13 = scmp.ne.s32.totalorder %s871_s14, %s867_s13 }
  0x3f   : > { %p25_p6 = scmp.eq.s32.totalorder %s24_s6, 0  ;;  %p35_p10 = scmp.eq.s32.totalorder %s875_s15, 0 }
  0x40   : > { %p1153_p3 = scmp.eq.s32.totalorder %s926_s16, 1  ;;  %p677_p7 = scmp.lt.s32.totalorder %s875_s15, 2 }
  0x41   : > { %s1032_s8 = scalar_select %p25_p6, %s871_s14, %s27_s23  }
  0x42   : > { %p1026_p5 = por %p1153_p3, %p34_p13  ;;  %p36_p9 = por %p35_p10, %p34_p13 }
  0x43   : > { %s156_s9 = sand.u32 1, %s871_s14   ;;  %s610_s25 = sshll.u32 %s875_s15, 6 }
  0x44   : > { %s1154_s7 = scalar_select %p1026_p5, 1, 0 }
  0x45   : > { %s609_s10 = sshll.u32 %s156_s9, 2  ;;  %s1039_s21 = scalar_lea.hbm %s1142_s0, %s610_s25 }
  0x46   : > { %s160_s24 = scalar_lea.vmem [#allocation3], %s609_s10  ;;  %p1043_p11 = pnand %p677_p7, %p36_p9 }
  0x47   : > { %s167_s26 = sshll.u32 %s160_s24, 4  ;;  %s157_s28 = scalar_lea.sflag [#allocation4], %s156_s9  ;;  %s1041_s26 = int_to_ptr.vmem [resolvable:$true] %s167_s26 }
  0x48   : > { %s775_s22 = scalar_lea.hbm %s1039_s21, 64  ;;  %p777_p0 = pneg %p1043_p11 }
  0x49   : > { %p776_p12 = scmp.ne.s32.totalorder %s1039_s21, %s775_s22  ;;  %s780_s4 = scalar_lea.hbm %s1142_s0, 128 }
  0x4a   : > { %p781_p13 = scmp.lt.u32.totalorder %s1039_s21, %s1142_s0  ;;  %p782_p6 = scmp.lt.u32.totalorder %s780_s4, %s775_s22 }
  0x4b   : > { %p778_p2 = pnand %p777_p0, %p776_p12  ;;  %p784_p3 = scmp.lt.u32.totalorder %s775_s22, %s1039_s21 }
  0x4c   : > { %p783_p10 = por %p782_p6, %p781_p13 }
  0x4d   : > { %p779_p1 = pneg %p778_p2 }
  0x4e   : > { %p785_p7 = por %p784_p3, %p783_p10 }
  0x50   : > { %p786_p9 = pnand %p785_p7, %p779_p1 }
  0x52   : > { %789 = shalt.err (!%p786_p9)
}
  0x53   : > { %s790_s9 = scalar_lea.vmem %s1041_s26, 64  ;;  %s881_s10 = smov [#allocation3]  }
  0x54   : > { %p791_p12 = scmp.ne.s32.totalorder %s1041_s26, %s790_s9  ;;  %s795_s25 = sshll.u32 %s881_s10, 4  ;;  %s796_s25 = int_to_ptr.vmem [resolvable:$false] %s795_s25 }
  0x55   : > { %s797_s11 = scalar_lea.vmem %s796_s25, 128  ;;  %p798_p4 = scmp.lt.s32.totalorder %s1041_s26, %s796_s25 }
  0x56   : > { %p793_p2 = pnand %p791_p12, %p777_p0  ;;  %p799_p13 = scmp.lt.s32.totalorder %s797_s11, %s790_s9 }
  0x58   : > { %p794_p5 = pneg %p793_p2  ;;  %p800_p6 = por %p799_p13, %p798_p4 }
  0x5a   : > { %p801_p10 = pnand %p800_p6, %p794_p5 }
  0x5c   : > { %804 = shalt.err (!%p801_p10)
}
  0x5d   : > { %670 = dma.hbm_to_vmem [thread:$0]  (!%p1043_p11), %s1039_s21, 64, %s1041_s26, %s157_s28  }
  0x5e   : > { %176 = sbr.rel (%p945_p8) target bundleno = 481 (0x1e1), region = 32  ;;  %s1075_s17 = sand.u32 (!%p945_p8), 1, %s867_s13  }
  0x5f   : > { %s612_s24 = sshll.u32 (!%p945_p8), %s1075_s17, 2  ;;  %s179_s22 = scalar_lea.sflag (!%p945_p8), [#allocation4], %s1075_s17 }
  0x60   : > { %s182_s29 = scalar_lea.vmem (!%p945_p8), [#allocation3], %s612_s24  ;;  %p1156_p4 = scmp.ne.s32.totalorder (!%p945_p8), %s1149_s18, 0 }
  0x65   : > { %850 = dma.done.wait (%p1156_p4), %s179_s22, 64  }
  0x66   : > { %852 = vsyncadd (%p1156_p4), %s179_s22, 4294967232  ;;  %p1157_p5 = scmp.eq.s32.totalorder %s926_s16, 0 }
  0x68   : > { %854 = dma.done.wait (%p1157_p5), [#allocation7], 208   ;;  %p1158_p11 = pmov %p1157_p5 }
  0x69   : > { %v215_v0 = vld [vmem:[%s182_s29] sm:$0xf]  ;;  %vm213_vm0 = vcmask 24576   ;;  %v882_v1 = vmov 0.0   ;;  %v258_v2 = vld [vmem:[#allocation6 + $0x4] sm:$0xf] }
  0x6a   : > { %856 = vsyncadd (%p1158_p11), [#allocation7], 4294967088  ;;  %216 = vxpose.xlu0.b32.start.end [1/1] (short) (narrow) %v215_v0, 16  ;;  %214 = vst.msk [vmem:[#allocation2] sm:$0x1] %vm213_vm0, %v882_v1  ;;  %633 = vmatprep.subr.mxu0 %v882_v1  ;;  %vm262_vm1 = vcmask 1043456  }
  0x6b   : > { %638 = vmatprep.subr.mxu1 %v882_v1  ;;  %v256_v3 = vld [vmem:[#allocation6] sm:$0xf]  ;;  %634 = vmatpush3.msk.msra.mxu0 %vm262_vm1, %v258_v2  ;;  %vm883_vm2 = vmmov 0   ;;  %vm248_vm3 = vcmask 31744   ;;  %v413_v6 = vld [vmem:[#allocation6 + $0x8] sm:$0xf] }
  0x6c   : > { %635 = vmatprep.mubr.msk.f32.mxu0 %vm883_vm2, %v882_v1  ;;  %639 = vmatpush3.msk.msra.mxu1 %vm262_vm1, %v256_v3  ;;  %s615_s18 = sshll.u32 %s1075_s17, 3  ;;  %v622_v16 = vld [vmem:[#allocation8] ss:$0 sm:$0xff]  ;;  %s624_s20 = sshll.u32 %s926_s16, 7  ;;  %vm499_vm4 = vcmask 64512  }
  0x6d   : > { %640 = vmatprep.mubr.msk.f32.mxu1 %vm883_vm2, %v882_v1  ;;  %643 = vmatprep.subr.mxu0 %v882_v1  ;;  %s212_s21 = scalar_lea.vmem [#allocation9], %s615_s18  ;;  %s1098_s30 = scalar_lea.hbm %s1145_s3, %s624_s20 }
  0x6e   : > { %s515_s26 = sshll.u32 %s212_s21, 4  ;;  %s502_s4 = scalar_lea.sflag [#allocation5], %s1075_s17  ;;  %s1100_s26 = int_to_ptr.vmem [resolvable:$true] %s515_s26 }
  0x6f   : > { %s805_s23 = scalar_lea.vmem %s1100_s26, 128  ;;  %p1159_p0 = scmp.ne.s32.totalorder %s1154_s7, 0 }
  0x70   : > { %p806_p8 = scmp.ne.s32.totalorder %s1100_s26, %s805_s23  ;;  %s884_s16 = smov [#allocation9]  }
  0x71   : > { %s809_s6 = sshll.u32 %s884_s16, 4  ;;  %s810_s6 = int_to_ptr.vmem [resolvable:$false] %s809_s6 }
  0x72   : > { %p807_p1 = pnand %p806_p8, %p1159_p0  ;;  %s811_s9 = scalar_lea.vmem %s810_s6, 256 }
  0x73   : > { %p812_p7 = scmp.lt.s32.totalorder %s1100_s26, %s810_s6  ;;  %p813_p9 = scmp.lt.s32.totalorder %s811_s9, %s805_s23 }
  0x74   : > { %p808_p3 = pneg %p807_p1 }
  0x75   : > { %p814_p12 = por %p813_p9, %p812_p7 }
  0x77   : > { %p815_p2 = pnand %p814_p12, %p808_p3 }
  0xea   : > { %v232_v4 = vpop.trf.xlu0 }
  0xeb   : > { %249 = vst.msk [vmem:[#allocation2 + $0x1] sm:$0xff] %vm248_vm3, %v232_v4 }
  0xee   : > { %v233_v5 = vpop.trf.xlu0 }
  0xef   : > { %250 = vst.msk [vmem:[#allocation2 + $0x9] sm:$0xff] %vm248_vm3, %v233_v5 }
  0xf6   : > { %v253_v7 = vld [vmem:[#allocation2 + $0x1] ss:$2 sm:$0xff]  ;;  %v251_v8 = vld [vmem:[#allocation2] ss:$2 sm:$0xff] }
  0xf7   : > { %636 = vmatmul.mubr.msk.f32.vlgmr.msra.gmra.mrb[0].mxu0 %vm248_vm3, %v253_v7  ;;  %641 = vmatmul.mubr.msk.f32.vlgmr.msra.gmra.mrb[0].mxu1 %vm248_vm3, %v251_v8  ;;  %v255_v9 = vld [vmem:[#allocation2 + $0x2] ss:$2 sm:$0xff] }
  0xf8   : > { %644 = vmatpush3.msk.msra.mxu0 %vm262_vm1, %v413_v6  ;;  %645 = vmatprep.mubr.msk.f32.mxu0 %vm883_vm2, %v882_v1 }
  0xfb   : > { %646 = vmatmul.mubr.msk.f32.vlgmr.msra.gmra.mrb[2].mxu0 %vm248_vm3, %v255_v9 }
 0x1ca   : > { %v332_v10 = vpop.f32.mrb[0].mxu0  ;;  %v408_v11 = vpop.f32.mrb[0].mxu1 }
 0x1cb   : > { %v409_v12 = vadd.f32 %v408_v11, %v332_v10  ;;  %v637_v13 = vpop.f32.mrb[1].mxu0  ;;  %v642_v14 = vpop.f32.mrb[1].mxu1 }
 0x1ce   : > { %v486_v15 = vpop.f32.mrb[2].mxu0 }
 0x1cf   : > { %v490_v17 = vadd.f32 %v486_v15, %v409_v12  ;;  %v647_v18 = vpop.f32.mrb[3].mxu0 }
 0x1d1   : > { %v498_v19 = vadd.f32 %v622_v16, %v490_v17 }
 0x1d3   : > { %500 = vst.msk [vmem:[%s212_s21] sm:$0xff] %vm499_vm4, %v498_v19 }
 0x1d4   : > { %818 = shalt.err (!%p815_p2)
}
 0x1d5   : > { %s819_s10 = scalar_lea.hbm %s1098_s30, 128  ;;  %s823_s17 = scalar_lea.hbm %s1145_s3, 256 }
 0x1d6   : > { %p820_p13 = scmp.ne.s32.totalorder %s1098_s30, %s819_s10  ;;  %p824_p4 = scmp.lt.u32.totalorder %s1098_s30, %s1145_s3 }
 0x1d7   : > { %p825_p5 = scmp.lt.u32.totalorder %s823_s17, %s819_s10  ;;  %p827_p8 = scmp.lt.u32.totalorder %s819_s10, %s1098_s30 }
 0x1d8   : > { %p821_p6 = pnand %p820_p13, %p1159_p0 }
 0x1d9   : > { %p826_p11 = por %p825_p5, %p824_p4 }
 0x1da   : > { %p822_p10 = pneg %p821_p6 }
 0x1db   : > { %p828_p1 = por %p827_p8, %p826_p11 }
 0x1dd   : > { %p829_p3 = pnand %p828_p1, %p822_p10 }
 0x1df   : > { %832 = shalt.err (!%p829_p3)
}
 0x1e0   : > { %658 = dma.vmem_to_hbm [thread:$0]  (%p1159_p0), %s1100_s26, 128, %s1098_s30, %s502_s4  }
 0x1e1 PF: > { %s527_s29 = sand.u32 1, %s863_s12   ;;  %p1160_p7 = scmp.ne.s32.totalorder %s1150_s19, 0 }
 0x1e2   : > { %p1161_p9 = scmp.ge.s32.totalorder %s875_s15, 2  ;;  %s528_s18 = scalar_lea.sflag [#allocation5], %s527_s29 }
 0x1e4   : > { %p672_p12 = pnand %p1161_p9, %p1160_p7 }
 0x1e6   : > { %858 = dma.done.wait (!%p672_p12), %s528_s18, 128  }
 0x1e7   : > { %860 = vsyncadd (!%p672_p12), %s528_s18, 4294967168  ;;  %p17_p2 = scmp.ge.s32.totalorder %s1016_s5, 4   ;;  %s1162_s12 = smov %s867_s13 }
 0x1e8   : > { %s1163_s13 = smov %s871_s14  ;;  %s1164_s14 = smov %s1032_s8 }
 0x1e9   : > { %s1165_s15 = smov %s1016_s5  ;;  %19 = sbr.rel (!%p17_p2) target bundleno = 6 (0x6), region = 89 }
 0x1f0   :  { %533 = vsyncpa [#allocation4], 1 }
 0x1f1   :  { %535 = vsyncpa [#allocation4 + $0x1], 1 }
 0x1f2   :  { %536 = vsyncpa [#allocation7], 1 }
 0x1f3   :  { %537 = vsyncpa [#allocation5], 1 }
 0x1f4   :  { %539 = vsyncpa [#allocation5 + $0x1], 1 }

</bundles_post_ra>
